<compile_context>
chip_gen: v5e
topology: v5e:2x2
jax: 0.10.0
libtpu: 0.0.40
codegen_flags: <defaults>
</compile_context>

<pallas_src>
import functools

import jax
import jax.numpy as jnp
from jax import lax
from jax.experimental import pallas as pl
from jax.experimental.pallas import tpu as pltpu

_NEG_INF = float(-jnp.finfo(jnp.float32).max)


# --------------------------------------------------------------------------
# Kernel 1: RMSNorm + q / kv projections
#   q out:  (B, H, N, Dh)  bf16, pre-scaled by dim_head**-0.5
#   kv out: (B, N, 2*Dh)   bf16 (k | v packed -> lane-dense slab)
# --------------------------------------------------------------------------
def _proj_kernel(x_ref, g_ref, wq_ref, wkv_ref, q_ref, kv_ref, *,
                 heads, dim_head, eps, scale):
    x = x_ref[0].astype(jnp.float32)                         # (tn, D)
    d = x.shape[-1]
    # torch: norm = ||x||_2 * D^-0.5 ; xn = x / clamp(norm, eps) * g
    #   ==   xn = x * min(rsqrt(mean(x^2)), 1/eps) * g       (rsqrt -> EUP)
    ms = jnp.sum(x * x, axis=-1, keepdims=True) * (1.0 / d)
    inv = jnp.minimum(lax.rsqrt(ms), 1.0 / eps)
    xn = (x * inv * g_ref[...]).astype(jnp.bfloat16)         # bf16 MXU operand

    # q gets the dim_head**-0.5 attention scale folded in (applied in f32).
    q = jnp.dot(xn, wq_ref[...], preferred_element_type=jnp.float32) * scale
    q = q.astype(q_ref.dtype)                                # (tn, H*Dh)
    for h in range(heads):                                   # head-major layout
        q_ref[0, h] = q[:, h * dim_head:(h + 1) * dim_head]

    kv = jnp.dot(xn, wkv_ref[...], preferred_element_type=jnp.float32)
    kv_ref[0] = kv.astype(kv_ref.dtype)                      # packed (tn, 2*Dh)


# --------------------------------------------------------------------------
# Kernel 2: flash-style causal attention (heads batched) + fused out proj
# --------------------------------------------------------------------------
def _attn_kernel(*refs, heads, dim_head, tq, tk, has_bias):
    if has_bias:
        q_ref, kv_ref, wo_ref, bias_ref, o_ref, m_sc, l_sc, acc_sc = refs
    else:
        q_ref, kv_ref, wo_ref, o_ref, m_sc, l_sc, acc_sc = refs
        bias_ref = None

    qi = pl.program_id(1)
    ki = pl.program_id(2)
    nk = pl.num_programs(2)
    hq = heads * tq

    @pl.when(ki == 0)
    def _init():
        m_sc[...] = jnp.full_like(m_sc, -jnp.inf)
        l_sc[...] = jnp.zeros_like(l_sc)
        acc_sc[...] = jnp.zeros_like(acc_sc)

    def _step(apply_mask):
        # (H, tq, Dh) -> (H*tq, Dh): merge of leading dims, layout-preserving
        # (tq is always a multiple of 8).
        q = q_ref[0].reshape(hq, dim_head)                   # bf16, pre-scaled
        kvb = kv_ref[0]                                      # (tk, 2*Dh) bf16
        k = kvb[:, :dim_head]
        v = kvb[:, dim_head:]

        # ONE QK^T for all heads (contract over Dh).
        sim = lax.dot_general(q, k, (((1,), (1,)), ((), ())),
                              preferred_element_type=jnp.float32)  # (H*tq, tk)
        if has_bias:
            sim = sim + bias_ref[0].reshape(hq, tk).astype(jnp.float32)
        if apply_mask:                                        # diagonal tiles only
            r = lax.broadcasted_iota(jnp.int32, (hq, tk), 0)
            row = qi * tq + (r % tq)                          # seq row per head-row
            col = ki * tk + lax.broadcasted_iota(jnp.int32, (hq, tk), 1)
            sim = jnp.where(col > row, _NEG_INF, sim)

        m_prev = m_sc[...]                                    # (H*tq, 1)
        m_new = jnp.maximum(m_prev, jnp.max(sim, axis=-1, keepdims=True))
        alpha = jnp.exp(m_prev - m_new)
        p = jnp.exp(sim - m_new)                              # (H*tq, tk) f32
        l_sc[...] = alpha * l_sc[...] + jnp.sum(p, axis=-1, keepdims=True)
        # ONE PV matmul for all heads (v is shared across heads).
        pv = jnp.dot(p.astype(v.dtype), v, preferred_element_type=jnp.float32)
        acc_sc[...] = alpha * acc_sc[...] + pv
        m_sc[...] = m_new

    first_row = qi * tq
    last_row = qi * tq + tq - 1
    first_col = ki * tk
    last_col = ki * tk + tk - 1

    # Interior kv tile: entirely below the causal diagonal -> no mask math.
    @pl.when(last_col <= first_row)
    def _interior():
        _step(False)

    # Boundary kv tile: straddles the diagonal -> masked path.
    @pl.when(jnp.logical_and(first_col <= last_row, last_col > first_row))
    def _boundary():
        _step(True)

    # (Tiles entirely in the masked future run neither branch; their kv/bias
    #  blocks are also never DMA'd thanks to the clamped index_maps.)

    @pl.when(ki == nk - 1)
    def _finalize():
        inv_l = pl.reciprocal(l_sc[...], approx=True)         # EUP
        accn = (acc_sc[...] * inv_l).astype(jnp.bfloat16)     # (H*tq, Dh)
        wo = wo_ref[...]                                      # (H*Dh, D) bf16
        d_model = wo.shape[-1]
        out = jnp.zeros((tq, d_model), jnp.float32)
        # Per-head (tq,Dh)@(Dh,D) accumulation == concat(heads) @ Wo, without
        # any transpose/relayout of acc.  Runs once per q tile.
        for h in range(heads):
            out = out + jnp.dot(accn[h * tq:(h + 1) * tq, :],
                                wo[h * dim_head:(h + 1) * dim_head, :],
                                preferred_element_type=jnp.float32)
        o_ref[0] = out.astype(o_ref.dtype)                    # lane-dense (tq, D)


# --------------------------------------------------------------------------
# Wrapper helpers
# --------------------------------------------------------------------------
def _hw_config():
    """Generation-aware (tq_target, tn_target, vmem_limit_bytes)."""
    try:
        kind = jax.devices()[0].device_kind.lower()
    except Exception:
        kind = ""
    if "v5" in kind or "v6" in kind:
        # 128 MiB VMEM parts: big tiles, generous scoped-VMEM headroom.
        return 512, 1024, 96 * 1024 * 1024
    # v7x (64 MiB physical VMEM) or unknown: conservative budget.
    # TODO(synk): on v7x, if B * (Np // tq) < 2, split the q axis so both
    # TensorCores get parallel grid work.
    return 256, 512, 48 * 1024 * 1024


def _plan_tiles(n, tq_target, tn_target):
    """Choose (tn, tq, tk, padded_n); pad-to-multiple instead of divisor hunt."""
    if n <= tq_target:
        t = max(8, ((n + 7) // 8) * 8)        # single tile, padded to sublane mult
        return t, t, t, t
    padded = ((n + tq_target - 1) // tq_target) * tq_target
    tn = tn_target if padded % tn_target == 0 else tq_target
    return tn, tq_target, tq_target, padded


def _const_spec(shape, single_buffer):
    """BlockSpec for a block whose index is constant across the grid."""
    index_map = lambda *_: (0,) * len(shape)
    if single_buffer:
        return pl.BlockSpec(shape, index_map, pipeline_mode=pl.Buffered(1))
    return pl.BlockSpec(shape, index_map)


# --------------------------------------------------------------------------
# Wrapper
# --------------------------------------------------------------------------
def attention_forward(x, g, wq, wkv, wo, attn_bias=None, *, heads, dim_head,
                      eps=1e-8, single_buffer_weights=True):
    B, N, D = x.shape
    inner = heads * dim_head
    scale = dim_head ** -0.5
    out_dtype = x.dtype                     # captured BEFORE any casting

    tq_target, tn_target, vmem_limit = _hw_config()
    tn, tq, tk, Np = _plan_tiles(N, tq_target, tn_target)

    if Np != N:
        # Zero-pad the sequence axis; padded key columns are causally masked
        # for real rows, padded query rows are sliced off at the end.
        x = jnp.pad(x, ((0, 0), (0, Np - N), (0, 0)))
        if attn_bias is not None:
            attn_bias = jnp.pad(attn_bias,
                                ((0, 0), (0, 0), (0, Np - N), (0, Np - N)))

    g2 = g.reshape(1, D).astype(jnp.float32)
    # Weights streamed as bf16 (MXU-native); accumulation stays f32.
    wq_b = wq.astype(jnp.bfloat16)
    wkv_b = wkv.astype(jnp.bfloat16)
    wo_b = wo.astype(jnp.bfloat16)

    # ---- kernel 1: RMSNorm + projections -> q (B,H,Np,Dh), kv (B,Np,2*Dh) ----
    q, kv = pl.pallas_call(
        functools.partial(_proj_kernel, heads=heads, dim_head=dim_head,
                          eps=eps, scale=scale),
        out_shape=(jax.ShapeDtypeStruct((B, heads, Np, dim_head), jnp.bfloat16),
                   jax.ShapeDtypeStruct((B, Np, 2 * dim_head), jnp.bfloat16)),
        grid_spec=pltpu.PrefetchScalarGridSpec(
            num_scalar_prefetch=0,
            grid=(B, Np // tn),
            in_specs=[
                pl.BlockSpec((1, tn, D), lambda b, i: (b, i, 0)),
                _const_spec((1, D), single_buffer_weights),
                _const_spec((D, inner), single_buffer_weights),
                _const_spec((D, 2 * dim_head), single_buffer_weights),
            ],
            out_specs=(
                pl.BlockSpec((1, heads, tn, dim_head), lambda b, i: (b, 0, i, 0)),
                pl.BlockSpec((1, tn, 2 * dim_head), lambda b, i: (b, i, 0)),
            ),
        ),
        compiler_params=pltpu.CompilerParams(
            dimension_semantics=("parallel", "parallel"),
            vmem_limit_bytes=vmem_limit),
    )(x, g2, wq_b, wkv_b)

    # ---- kernel 2: flash attention + fused output projection ----
    has_bias = attn_bias is not None

    def _kv_idx(b, qi, ki):
        # Clamp past the causal boundary: repeated block index -> DMA skipped
        # for fully-masked future kv tiles.
        last = (qi * tq + tq - 1) // tk
        return (b, jnp.minimum(ki, last), 0)

    in_specs = [
        pl.BlockSpec((1, heads, tq, dim_head), lambda b, qi, ki: (b, 0, qi, 0)),
        pl.BlockSpec((1, tk, 2 * dim_head), _kv_idx),
        _const_spec((inner, D), single_buffer_weights),
    ]
    args = [q, kv, wo_b]
    if has_bias:
        def _bias_idx(b, qi, ki):
            last = (qi * tq + tq - 1) // tk
            return (b, 0, qi, jnp.minimum(ki, last))
        in_specs.append(pl.BlockSpec((1, heads, tq, tk), _bias_idx))
        # Stream bias in bf16 (halves the dominant DMA stream); upcast in-kernel.
        args.append(attn_bias.astype(jnp.bfloat16))

    out = pl.pallas_call(
        functools.partial(_attn_kernel, heads=heads, dim_head=dim_head,
                          tq=tq, tk=tk, has_bias=has_bias),
        out_shape=jax.ShapeDtypeStruct((B, Np, D), out_dtype),
        grid_spec=pltpu.PrefetchScalarGridSpec(
            num_scalar_prefetch=0,
            grid=(B, Np // tq, Np // tk),
            in_specs=in_specs,
            out_specs=pl.BlockSpec((1, tq, D), lambda b, qi, ki: (b, qi, 0)),
            scratch_shapes=[
                pltpu.VMEM((heads * tq, 1), jnp.float32),         # running max m
                pltpu.VMEM((heads * tq, 1), jnp.float32),         # running sum l
                pltpu.VMEM((heads * tq, dim_head), jnp.float32),  # un-normed attn@v
            ],
        ),
        compiler_params=pltpu.CompilerParams(
            dimension_semantics=("parallel", "parallel", "arbitrary"),
            vmem_limit_bytes=vmem_limit),
    )(*args)

    if Np != N:
        out = out[:, :N, :]
    return out


# --------------------------------------------------------------------------
# Pure-JAX reference (mirrors the PyTorch forward, all f32)
# --------------------------------------------------------------------------
def _reference(x, g, wq, wkv, wo, attn_bias, heads, dim_head, eps=1e-8):
    B, N, D = x.shape
    norm = jnp.sqrt(jnp.sum(x * x, axis=-1, keepdims=True)) * (D ** -0.5)
    xn = x / jnp.maximum(norm, eps) * g
    q = xn @ wq
    kv = xn @ wkv
    k, v = kv[..., :dim_head], kv[..., dim_head:]
    q = q.reshape(B, N, heads, dim_head).transpose(0, 2, 1, 3)
    sim = jnp.einsum('bhid,bjd->bhij', q, k) * (dim_head ** -0.5)
    if attn_bias is not None:
        sim = sim + attn_bias
    mask = jnp.triu(jnp.ones((N, N), bool), 1)
    sim = jnp.where(mask, -jnp.finfo(jnp.float32).max, sim)
    attn = jax.nn.softmax(sim, axis=-1)
    out = jnp.einsum('bhij,bjd->bhid', attn, v)
    out = out.transpose(0, 2, 1, 3).reshape(B, N, heads * dim_head)
    return out @ wo


if __name__ == "__main__":
    B, N, D = 2, 8, 32          # batch, seq, model dim
    H, Dh = 4, 16               # heads, dim_head -> inner_dim = 64

    key = jax.random.PRNGKey(0)
    k1, k2, k3, k4, k5 = jax.random.split(key, 5)
    x = jax.random.normal(k1, (B, N, D), jnp.float32)
    g = jnp.ones((D,), jnp.float32)                          # RMSNorm gain
    wq = jax.random.normal(k2, (D, H * Dh), jnp.float32) * 0.05
    wkv = jax.random.normal(k3, (D, 2 * Dh), jnp.float32) * 0.05
    wo = jax.random.normal(k4, (H * Dh, D), jnp.float32) * 0.05
    bias = jax.random.normal(k5, (B, H, N, N), jnp.float32) * 0.1

    def run(attn_bias, single_buffer):
        y = attention_forward(x, g, wq, wkv, wo, attn_bias=attn_bias,
                              heads=H, dim_head=Dh,
                              single_buffer_weights=single_buffer)
        return jax.block_until_ready(y)

    try:
        out_nobias = run(None, True)
        out_bias = run(bias, True)
    except Exception:
        # pl.Buffered(1) single-buffering of constant weight blocks may not be
        # supported on every jax/libtpu combo; fall back to default buffering.
        out_nobias = run(None, False)
        out_bias = run(bias, False)

    ref_nobias = _reference(x, g, wq, wkv, wo, None, H, Dh)
    ref_bias = _reference(x, g, wq, wkv, wo, bias, H, Dh)

    assert out_nobias.shape == (B, N, D)
    assert out_nobias.dtype == x.dtype
    # bf16 matmuls / bf16 bias stream (f32 accumulation) vs the all-f32
    # reference -> looser tolerance.
    assert jnp.allclose(out_nobias, ref_nobias, atol=2e-2, rtol=2e-2), "mismatch (no bias)"
    assert jnp.allclose(out_bias, ref_bias, atol=2e-2, rtol=2e-2), "mismatch (with bias)"

    print("KERNEL_OK")
</pallas_src>

<mosaic_0001>
module attributes {stable_mosaic.version = 11 : i64} {
  func.func @_proj_kernel(%arg0: i32, %arg1: i32, %arg2: memref<1x8x32xf32, #tpu.memory_space<vmem>>, %arg3: memref<1x32xf32, #tpu.memory_space<vmem>>, %arg4: memref<32x64xbf16, #tpu.memory_space<vmem>>, %arg5: memref<32x32xbf16, #tpu.memory_space<vmem>>, %arg6: memref<1x4x8x16xbf16, #tpu.memory_space<vmem>>, %arg7: memref<1x8x32xbf16, #tpu.memory_space<vmem>>) attributes {dimension_semantics = [#tpu.dimension_semantics<parallel>, #tpu.dimension_semantics<parallel>], iteration_bounds = array<i64: 2, 1>, scalar_prefetch = 0 : i64, scratch_operands = 0 : i64, tpu.core_type = #tpu.core_type<tc>, window_params = [{transform_indices = @transform_0, window_bounds = array<i64: 1, 8, 32>}, {pipeline_mode = #tpu.pipeline_mode<synchronous>, transform_indices = @transform_1, window_bounds = array<i64: 1, 32>}, {pipeline_mode = #tpu.pipeline_mode<synchronous>, transform_indices = @transform_2, window_bounds = array<i64: 32, 64>}, {pipeline_mode = #tpu.pipeline_mode<synchronous>, transform_indices = @transform_3, window_bounds = array<i64: 32, 32>}, {transform_indices = @transform_4, window_bounds = array<i64: 1, 4, 8, 16>}, {transform_indices = @transform_5, window_bounds = array<i64: 1, 8, 32>}]} {
    %c0 = arith.constant 0 : index
    %c0_0 = arith.constant 0 : index
    %c0_1 = arith.constant 0 : index
    %0 = vector.load %arg2[%c0, %c0_0, %c0_1] : memref<1x8x32xf32, #tpu.memory_space<vmem>>, vector<1x8x32xf32>
    %1 = vector.shape_cast %0 : vector<1x8x32xf32> to vector<8x32xf32>
    %2 = arith.mulf %1, %1 : vector<8x32xf32>
    %cst = arith.constant dense<0.000000e+00> : vector<8xf32>
    %3 = vector.multi_reduction <add>, %2, %cst [1] : vector<8x32xf32> to vector<8xf32>
    %4 = vector.shape_cast %3 : vector<8xf32> to vector<8x1xf32>
    %cst_2 = arith.constant 3.125000e-02 : f32
    %5 = vector.broadcast %cst_2 : f32 to vector<8x1xf32>
    %6 = arith.mulf %4, %5 : vector<8x1xf32>
    %7 = math.rsqrt %6 : vector<8x1xf32>
    %cst_3 = arith.constant 1.000000e+08 : f32
    %8 = vector.broadcast %cst_3 : f32 to vector<8x1xf32>
    %9 = arith.minimumf %7, %8 : vector<8x1xf32>
    %10 = vector.broadcast %9 : vector<8x1xf32> to vector<8x32xf32>
    %11 = arith.mulf %1, %10 : vector<8x32xf32>
    %c0_4 = arith.constant 0 : index
    %c0_5 = arith.constant 0 : index
    %12 = vector.load %arg3[%c0_4, %c0_5] : memref<1x32xf32, #tpu.memory_space<vmem>>, vector<1x32xf32>
    %13 = vector.broadcast %12 : vector<1x32xf32> to vector<8x32xf32>
    %14 = arith.mulf %11, %13 : vector<8x32xf32>
    %15 = arith.truncf %14 : vector<8x32xf32> to vector<8x32xbf16>
    %c0_6 = arith.constant 0 : index
    %c0_7 = arith.constant 0 : index
    %16 = vector.load %arg4[%c0_6, %c0_7] : memref<32x64xbf16, #tpu.memory_space<vmem>>, vector<32x64xbf16>
    %cst_8 = arith.constant dense<0.000000e+00> : vector<8x64xf32>
    %17 = tpu.matmul %15, %16, %cst_8 {dimension_numbers = #tpu.dot_dimension_numbers<[1], [0], [0], [1], [0, 0, 1, 1], [], []>} : vector<8x32xbf16>, vector<32x64xbf16>, vector<8x64xf32> -> vector<8x64xf32>
    %cst_9 = arith.constant 2.500000e-01 : f32
    %18 = vector.broadcast %cst_9 : f32 to vector<8x64xf32>
    %19 = arith.mulf %17, %18 : vector<8x64xf32>
    %20 = arith.truncf %19 : vector<8x64xf32> to vector<8x64xbf16>
    %21 = vector.extract_strided_slice %20 {offsets = [0, 0], sizes = [8, 16], strides = [1, 1]} : vector<8x64xbf16> to vector<8x16xbf16>
    %c0_10 = arith.constant 0 : index
    %c0_11 = arith.constant 0 : index
    %c0_12 = arith.constant 0 : index
    %c0_13 = arith.constant 0 : index
    %22 = vector.load %arg6[%c0_10, %c0_11, %c0_12, %c0_13] : memref<1x4x8x16xbf16, #tpu.memory_space<vmem>>, vector<1x1x8x16xbf16>
    %23 = vector.shape_cast %22 : vector<1x1x8x16xbf16> to vector<8x16xbf16>
    %24 = vector.shape_cast %21 : vector<8x16xbf16> to vector<1x1x8x16xbf16>
    tpu.vector_store %arg6[%c0_10, %c0_11, %c0_12, %c0_13], %24 {strides = array<i32>} : memref<1x4x8x16xbf16, #tpu.memory_space<vmem>>, vector<1x1x8x16xbf16>,
    %25 = vector.extract_strided_slice %20 {offsets = [0, 16], sizes = [8, 16], strides = [1, 1]} : vector<8x64xbf16> to vector<8x16xbf16>
    %c0_14 = arith.constant 0 : index
    %c1 = arith.constant 1 : index
    %c0_15 = arith.constant 0 : index
    %c0_16 = arith.constant 0 : index
    %26 = vector.load %arg6[%c0_14, %c1, %c0_15, %c0_16] : memref<1x4x8x16xbf16, #tpu.memory_space<vmem>>, vector<1x1x8x16xbf16>
    %27 = vector.shape_cast %26 : vector<1x1x8x16xbf16> to vector<8x16xbf16>
    %28 = vector.shape_cast %25 : vector<8x16xbf16> to vector<1x1x8x16xbf16>
    tpu.vector_store %arg6[%c0_14, %c1, %c0_15, %c0_16], %28 {strides = array<i32>} : memref<1x4x8x16xbf16, #tpu.memory_space<vmem>>, vector<1x1x8x16xbf16>,
    %29 = vector.extract_strided_slice %20 {offsets = [0, 32], sizes = [8, 16], strides = [1, 1]} : vector<8x64xbf16> to vector<8x16xbf16>
    %c0_17 = arith.constant 0 : index
    %c2 = arith.constant 2 : index
    %c0_18 = arith.constant 0 : index
    %c0_19 = arith.constant 0 : index
    %30 = vector.load %arg6[%c0_17, %c2, %c0_18, %c0_19] : memref<1x4x8x16xbf16, #tpu.memory_space<vmem>>, vector<1x1x8x16xbf16>
    %31 = vector.shape_cast %30 : vector<1x1x8x16xbf16> to vector<8x16xbf16>
    %32 = vector.shape_cast %29 : vector<8x16xbf16> to vector<1x1x8x16xbf16>
    tpu.vector_store %arg6[%c0_17, %c2, %c0_18, %c0_19], %32 {strides = array<i32>} : memref<1x4x8x16xbf16, #tpu.memory_space<vmem>>, vector<1x1x8x16xbf16>,
    %33 = vector.extract_strided_slice %20 {offsets = [0, 48], sizes = [8, 16], strides = [1, 1]} : vector<8x64xbf16> to vector<8x16xbf16>
    %c0_20 = arith.constant 0 : index
    %c3 = arith.constant 3 : index
    %c0_21 = arith.constant 0 : index
    %c0_22 = arith.constant 0 : index
    %34 = vector.load %arg6[%c0_20, %c3, %c0_21, %c0_22] : memref<1x4x8x16xbf16, #tpu.memory_space<vmem>>, vector<1x1x8x16xbf16>
    %35 = vector.shape_cast %34 : vector<1x1x8x16xbf16> to vector<8x16xbf16>
    %36 = vector.shape_cast %33 : vector<8x16xbf16> to vector<1x1x8x16xbf16>
    tpu.vector_store %arg6[%c0_20, %c3, %c0_21, %c0_22], %36 {strides = array<i32>} : memref<1x4x8x16xbf16, #tpu.memory_space<vmem>>, vector<1x1x8x16xbf16>,
    %c0_23 = arith.constant 0 : index
    %c0_24 = arith.constant 0 : index
    %37 = vector.load %arg5[%c0_23, %c0_24] : memref<32x32xbf16, #tpu.memory_space<vmem>>, vector<32x32xbf16>
    %cst_25 = arith.constant dense<0.000000e+00> : vector<8x32xf32>
    %38 = tpu.matmul %15, %37, %cst_25 {dimension_numbers = #tpu.dot_dimension_numbers<[1], [0], [0], [1], [0, 0, 1, 1], [], []>} : vector<8x32xbf16>, vector<32x32xbf16>, vector<8x32xf32> -> vector<8x32xf32>
    %39 = arith.truncf %38 : vector<8x32xf32> to vector<8x32xbf16>
    %c0_26 = arith.constant 0 : index
    %c0_27 = arith.constant 0 : index
    %c0_28 = arith.constant 0 : index
    %40 = vector.load %arg7[%c0_26, %c0_27, %c0_28] : memref<1x8x32xbf16, #tpu.memory_space<vmem>>, vector<1x8x32xbf16>
    %41 = vector.shape_cast %40 : vector<1x8x32xbf16> to vector<8x32xbf16>
    %42 = vector.shape_cast %39 : vector<8x32xbf16> to vector<1x8x32xbf16>
    tpu.vector_store %arg7[%c0_26, %c0_27, %c0_28], %42 {strides = array<i32>} : memref<1x8x32xbf16, #tpu.memory_space<vmem>>, vector<1x8x32xbf16>,
    return
  }
  func.func @transform_0(%arg0: i32, %arg1: i32) -> (i32, i32, i32) {
    %c0_i32 = arith.constant 0 : i32
    %c0_i32_0 = arith.constant 0 : i32
    return %arg0, %arg1, %c0_i32 : i32, i32, i32
  }
  func.func @transform_1(%arg0: i32, %arg1: i32) -> (i32, i32) {
    %c0_i32 = arith.constant 0 : i32
    %c0_i32_0 = arith.constant 0 : i32
    %c0_i32_1 = arith.constant 0 : i32
    return %c0_i32, %c0_i32_0 : i32, i32
  }
  func.func @transform_2(%arg0: i32, %arg1: i32) -> (i32, i32) {
    %c0_i32 = arith.constant 0 : i32
    %c0_i32_0 = arith.constant 0 : i32
    %c0_i32_1 = arith.constant 0 : i32
    return %c0_i32, %c0_i32_0 : i32, i32
  }
  func.func @transform_3(%arg0: i32, %arg1: i32) -> (i32, i32) {
    %c0_i32 = arith.constant 0 : i32
    %c0_i32_0 = arith.constant 0 : i32
    %c0_i32_1 = arith.constant 0 : i32
    return %c0_i32, %c0_i32_0 : i32, i32
  }
  func.func @transform_4(%arg0: i32, %arg1: i32) -> (i32, i32, i32, i32) {
    %c0_i32 = arith.constant 0 : i32
    %c0_i32_0 = arith.constant 0 : i32
    %c0_i32_1 = arith.constant 0 : i32
    return %arg0, %c0_i32, %arg1, %c0_i32_0 : i32, i32, i32, i32
  }
  func.func @transform_5(%arg0: i32, %arg1: i32) -> (i32, i32, i32) {
    %c0_i32 = arith.constant 0 : i32
    %c0_i32_0 = arith.constant 0 : i32
    return %arg0, %arg1, %c0_i32 : i32, i32, i32
  }
}

module attributes {stable_mosaic.version = 11 : i64} {
  func.func @_proj_kernel(%arg0: i32, %arg1: i32, %arg2: memref<1x8x32xf32, #tpu.memory_space<vmem>>, %arg3: memref<1x32xf32, #tpu.memory_space<vmem>>, %arg4: memref<32x64xbf16, #tpu.memory_space<vmem>>, %arg5: memref<32x32xbf16, #tpu.memory_space<vmem>>, %arg6: memref<1x4x8x16xbf16, #tpu.memory_space<vmem>>, %arg7: memref<1x8x32xbf16, #tpu.memory_space<vmem>>) attributes {dimension_semantics = [#tpu.dimension_semantics<parallel>, #tpu.dimension_semantics<parallel>], iteration_bounds = array<i64: 2, 1>, scalar_prefetch = 0 : i64, scratch_operands = 0 : i64, tpu.core_type = #tpu.core_type<tc>, window_params = [{transform_indices = @transform_0, window_bounds = array<i64: 1, 8, 32>}, {pipeline_mode = #tpu.pipeline_mode<synchronous>, transform_indices = @transform_1, window_bounds = array<i64: 1, 32>}, {pipeline_mode = #tpu.pipeline_mode<synchronous>, transform_indices = @transform_2, window_bounds = array<i64: 32, 64>}, {pipeline_mode = #tpu.pipeline_mode<synchronous>, transform_indices = @transform_3, window_bounds = array<i64: 32, 32>}, {transform_indices = @transform_4, window_bounds = array<i64: 1, 4, 8, 16>}, {transform_indices = @transform_5, window_bounds = array<i64: 1, 8, 32>}]} {
    %c0 = arith.constant 0 : index
    %c0_0 = arith.constant 0 : index
    %c0_1 = arith.constant 0 : index
    %0 = vector.load %arg2[%c0, %c0_0, %c0_1] : memref<1x8x32xf32, #tpu.memory_space<vmem>>, vector<1x8x32xf32>
    %1 = vector.shape_cast %0 : vector<1x8x32xf32> to vector<8x32xf32>
    %2 = arith.mulf %1, %1 : vector<8x32xf32>
    %cst = arith.constant dense<0.000000e+00> : vector<8xf32>
    %3 = vector.multi_reduction <add>, %2, %cst [1] : vector<8x32xf32> to vector<8xf32>
    %4 = vector.shape_cast %3 : vector<8xf32> to vector<8x1xf32>
    %cst_2 = arith.constant 3.125000e-02 : f32
    %5 = vector.broadcast %cst_2 : f32 to vector<8x1xf32>
    %6 = arith.mulf %4, %5 : vector<8x1xf32>
    %7 = math.rsqrt %6 : vector<8x1xf32>
    %cst_3 = arith.constant 1.000000e+08 : f32
    %8 = vector.broadcast %cst_3 : f32 to vector<8x1xf32>
    %9 = arith.minimumf %7, %8 : vector<8x1xf32>
    %10 = vector.broadcast %9 : vector<8x1xf32> to vector<8x32xf32>
    %11 = arith.mulf %1, %10 : vector<8x32xf32>
    %c0_4 = arith.constant 0 : index
    %c0_5 = arith.constant 0 : index
    %12 = vector.load %arg3[%c0_4, %c0_5] : memref<1x32xf32, #tpu.memory_space<vmem>>, vector<1x32xf32>
    %13 = vector.broadcast %12 : vector<1x32xf32> to vector<8x32xf32>
    %14 = arith.mulf %11, %13 : vector<8x32xf32>
    %15 = arith.truncf %14 : vector<8x32xf32> to vector<8x32xbf16>
    %c0_6 = arith.constant 0 : index
    %c0_7 = arith.constant 0 : index
    %16 = vector.load %arg4[%c0_6, %c0_7] : memref<32x64xbf16, #tpu.memory_space<vmem>>, vector<32x64xbf16>
    %cst_8 = arith.constant dense<0.000000e+00> : vector<8x64xf32>
    %17 = tpu.matmul %15, %16, %cst_8 {dimension_numbers = #tpu.dot_dimension_numbers<[1], [0], [0], [1], [0, 0, 1, 1], [], []>} : vector<8x32xbf16>, vector<32x64xbf16>, vector<8x64xf32> -> vector<8x64xf32>
    %cst_9 = arith.constant 2.500000e-01 : f32
    %18 = vector.broadcast %cst_9 : f32 to vector<8x64xf32>
    %19 = arith.mulf %17, %18 : vector<8x64xf32>
    %20 = arith.truncf %19 : vector<8x64xf32> to vector<8x64xbf16>
    %21 = vector.extract_strided_slice %20 {offsets = [0, 0], sizes = [8, 16], strides = [1, 1]} : vector<8x64xbf16> to vector<8x16xbf16>
    %c0_10 = arith.constant 0 : index
    %c0_11 = arith.constant 0 : index
    %c0_12 = arith.constant 0 : index
    %c0_13 = arith.constant 0 : index
    %22 = vector.load %arg6[%c0_10, %c0_11, %c0_12, %c0_13] : memref<1x4x8x16xbf16, #tpu.memory_space<vmem>>, vector<1x1x8x16xbf16>
    %23 = vector.shape_cast %22 : vector<1x1x8x16xbf16> to vector<8x16xbf16>
    %24 = vector.shape_cast %21 : vector<8x16xbf16> to vector<1x1x8x16xbf16>
    tpu.vector_store %arg6[%c0_10, %c0_11, %c0_12, %c0_13], %24 {strides = array<i32>} : memref<1x4x8x16xbf16, #tpu.memory_space<vmem>>, vector<1x1x8x16xbf16>,
    %25 = vector.extract_strided_slice %20 {offsets = [0, 16], sizes = [8, 16], strides = [1, 1]} : vector<8x64xbf16> to vector<8x16xbf16>
    %c0_14 = arith.constant 0 : index
    %c1 = arith.constant 1 : index
    %c0_15 = arith.constant 0 : index
    %c0_16 = arith.constant 0 : index
    %26 = vector.load %arg6[%c0_14, %c1, %c0_15, %c0_16] : memref<1x4x8x16xbf16, #tpu.memory_space<vmem>>, vector<1x1x8x16xbf16>
    %27 = vector.shape_cast %26 : vector<1x1x8x16xbf16> to vector<8x16xbf16>
    %28 = vector.shape_cast %25 : vector<8x16xbf16> to vector<1x1x8x16xbf16>
    tpu.vector_store %arg6[%c0_14, %c1, %c0_15, %c0_16], %28 {strides = array<i32>} : memref<1x4x8x16xbf16, #tpu.memory_space<vmem>>, vector<1x1x8x16xbf16>,
    %29 = vector.extract_strided_slice %20 {offsets = [0, 32], sizes = [8, 16], strides = [1, 1]} : vector<8x64xbf16> to vector<8x16xbf16>
    %c0_17 = arith.constant 0 : index
    %c2 = arith.constant 2 : index
    %c0_18 = arith.constant 0 : index
    %c0_19 = arith.constant 0 : index
    %30 = vector.load %arg6[%c0_17, %c2, %c0_18, %c0_19] : memref<1x4x8x16xbf16, #tpu.memory_space<vmem>>, vector<1x1x8x16xbf16>
    %31 = vector.shape_cast %30 : vector<1x1x8x16xbf16> to vector<8x16xbf16>
    %32 = vector.shape_cast %29 : vector<8x16xbf16> to vector<1x1x8x16xbf16>
    tpu.vector_store %arg6[%c0_17, %c2, %c0_18, %c0_19], %32 {strides = array<i32>} : memref<1x4x8x16xbf16, #tpu.memory_space<vmem>>, vector<1x1x8x16xbf16>,
    %33 = vector.extract_strided_slice %20 {offsets = [0, 48], sizes = [8, 16], strides = [1, 1]} : vector<8x64xbf16> to vector<8x16xbf16>
    %c0_20 = arith.constant 0 : index
    %c3 = arith.constant 3 : index
    %c0_21 = arith.constant 0 : index
    %c0_22 = arith.constant 0 : index
    %34 = vector.load %arg6[%c0_20, %c3, %c0_21, %c0_22] : memref<1x4x8x16xbf16, #tpu.memory_space<vmem>>, vector<1x1x8x16xbf16>
    %35 = vector.shape_cast %34 : vector<1x1x8x16xbf16> to vector<8x16xbf16>
    %36 = vector.shape_cast %33 : vector<8x16xbf16> to vector<1x1x8x16xbf16>
    tpu.vector_store %arg6[%c0_20, %c3, %c0_21, %c0_22], %36 {strides = array<i32>} : memref<1x4x8x16xbf16, #tpu.memory_space<vmem>>, vector<1x1x8x16xbf16>,
    %c0_23 = arith.constant 0 : index
    %c0_24 = arith.constant 0 : index
    %37 = vector.load %arg5[%c0_23, %c0_24] : memref<32x32xbf16, #tpu.memory_space<vmem>>, vector<32x32xbf16>
    %cst_25 = arith.constant dense<0.000000e+00> : vector<8x32xf32>
    %38 = tpu.matmul %15, %37, %cst_25 {dimension_numbers = #tpu.dot_dimension_numbers<[1], [0], [0], [1], [0, 0, 1, 1], [], []>} : vector<8x32xbf16>, vector<32x32xbf16>, vector<8x32xf32> -> vector<8x32xf32>
    %39 = arith.truncf %38 : vector<8x32xf32> to vector<8x32xbf16>
    %c0_26 = arith.constant 0 : index
    %c0_27 = arith.constant 0 : index
    %c0_28 = arith.constant 0 : index
    %40 = vector.load %arg7[%c0_26, %c0_27, %c0_28] : memref<1x8x32xbf16, #tpu.memory_space<vmem>>, vector<1x8x32xbf16>
    %41 = vector.shape_cast %40 : vector<1x8x32xbf16> to vector<8x32xbf16>
    %42 = vector.shape_cast %39 : vector<8x32xbf16> to vector<1x8x32xbf16>
    tpu.vector_store %arg7[%c0_26, %c0_27, %c0_28], %42 {strides = array<i32>} : memref<1x8x32xbf16, #tpu.memory_space<vmem>>, vector<1x8x32xbf16>,
    return
  }
  func.func @transform_0(%arg0: i32, %arg1: i32) -> (i32, i32, i32) {
    %c0_i32 = arith.constant 0 : i32
    %c0_i32_0 = arith.constant 0 : i32
    return %arg0, %arg1, %c0_i32 : i32, i32, i32
  }
  func.func @transform_1(%arg0: i32, %arg1: i32) -> (i32, i32) {
    %c0_i32 = arith.constant 0 : i32
    %c0_i32_0 = arith.constant 0 : i32
    %c0_i32_1 = arith.constant 0 : i32
    return %c0_i32, %c0_i32_0 : i32, i32
  }
  func.func @transform_2(%arg0: i32, %arg1: i32) -> (i32, i32) {
    %c0_i32 = arith.constant 0 : i32
    %c0_i32_0 = arith.constant 0 : i32
    %c0_i32_1 = arith.constant 0 : i32
    return %c0_i32, %c0_i32_0 : i32, i32
  }
  func.func @transform_3(%arg0: i32, %arg1: i32) -> (i32, i32) {
    %c0_i32 = arith.constant 0 : i32
    %c0_i32_0 = arith.constant 0 : i32
    %c0_i32_1 = arith.constant 0 : i32
    return %c0_i32, %c0_i32_0 : i32, i32
  }
  func.func @transform_4(%arg0: i32, %arg1: i32) -> (i32, i32, i32, i32) {
    %c0_i32 = arith.constant 0 : i32
    %c0_i32_0 = arith.constant 0 : i32
    %c0_i32_1 = arith.constant 0 : i32
    return %arg0, %c0_i32, %arg1, %c0_i32_0 : i32, i32, i32, i32
  }
  func.func @transform_5(%arg0: i32, %arg1: i32) -> (i32, i32, i32) {
    %c0_i32 = arith.constant 0 : i32
    %c0_i32_0 = arith.constant 0 : i32
    return %arg0, %arg1, %c0_i32 : i32, i32, i32
  }
}

</mosaic_0001>

<bundles_post_ra>
// kernel: tpu_custom_call.1
= control target key start
LH: loop header
LB: loop body
LE: loop exit
PB: predicated region body
PF: predicated region fallthrough
CT: control target
= control target key end

     0   :  { %s1257_s0 = inlined_call_operand.hbm [shape: f32[2,8,32], index: 0, kind: input, shape index: {}]   ;;  %s1258_s1 = inlined_call_operand.hbm [shape: f32[1,32], index: 1, kind: input, shape index: {}]   ;;  %s1259_s2 = inlined_call_operand.hbm [shape: bf16[32,64], index: 2, kind: input, shape index: {}]   ;;  %s1260_s3 = inlined_call_operand.hbm [shape: bf16[32,32], index: 3, kind: input, shape index: {}]   ;;  %s1261_s4 = inlined_call_operand.hbm [shape: bf16[2,4,8,16], index: 4, kind: output, shape index: {0}]   ;;  %s1262_s5 = inlined_call_operand.hbm [shape: bf16[2,8,32], index: 5, kind: output, shape index: {1}]  }
   0x1   :  { %1263 = sst [smem:[#allocation18_spill]] %s1258_s1 }
   0x2   :  { %11 = vsyncpa [#allocation3], 0 }
   0x3   :  { %13 = vsyncpa [#allocation3 + $0x1], 0 }
   0x4   :  { %14 = vsyncpa [#allocation6], 0 }
   0x5   :  { %15 = vsyncpa [#allocation9], 0 }
   0x6   :  { %16 = vsyncpa [#allocation4], 0 }
   0x7   :  { %18 = vsyncpa [#allocation4 + $0x1], 0 }
   0x8   :  { %19 = vsyncpa [#allocation12], 0 }
   0x9   :  { %21 = vsyncpa [#allocation12 + $0x1], 0  ;;  %s1055_s18 = smov 0   ;;  %s1057_s19 = smov 0  }
   0xa   :  { %s1059_s20 = smov 0   ;;  %s1061_s21 = smov 0  }
   0xb   :  { %s1063_s22 = smov 0   ;;  %s1065_s23 = smov 0  }
   0xc LB: > { %s614_s24 = sadd.s32 4294967295, %s1013_s23   ;;  %s615_s25 = sadd.s32 4294967294, %s1013_s23   ;;  %s1013_s23 = sphi %s1065_s23, %s27_s23   ;;  %s1009_s22 = sphi %s1063_s22, %s1277_s22   ;;  %s1005_s21 = sphi %s1061_s21, %s1276_s21   ;;  %s1001_s20 = sphi %s1059_s20, %s1275_s20   ;;  %s997_s19 = sphi %s1057_s19, %s1274_s19   ;;  %s993_s18 = sphi %s1055_s18, %s1273_s18  }
   0xd   : > { %p61_p0 = scmp.ne.s32.totalorder %s997_s19, %s993_s18  ;;  %p1089_p1 = scmp.eq.s32.totalorder %s614_s24, 0 }
   0xe   : > { %p1093_p2 = scmp.eq.s32.totalorder %s614_s24, 1  ;;  %p156_p3 = scmp.eq.s32.totalorder %s615_s25, 1 }
   0xf   : > { %p1099_p4 = por %p1089_p1, %p61_p0  ;;  %p616_p5 = scmp.ge.s32.totalorder %s1013_s23, 1 }
  0x10   : > { %p1104_p6 = por %p156_p3, %p61_p0  ;;  %p191_p7 = scmp.lt.s32.totalorder %s1013_s23, 3 }
  0x11   : > { %s1268_s1 = sld [smem:[#allocation18_spill]]  ;;  %p620_p9 = scmp.ge.s32.totalorder %s1013_s23, 2 }
  0x12   : > { %p1112_p8 = pnand %p616_p5, %p191_p7  ;;  %s1015_s9 = smov [#allocation5]  }
  0x13   : > { %s205_s10 = sshll.u32 %s1015_s9, 4  ;;  %s214_s13 = sshll.u32 %s1259_s2, 4  ;;  %s206_s10 = int_to_ptr.vmem [resolvable:$true] %s205_s10  ;;  %s215_s13 = int_to_ptr.hbm [resolvable:$true] %s214_s13 }
  0x14   : > { %p681_p10 = pneg %p1112_p8  ;;  %s1016_s15 = smov [#allocation7]  }
  0x15   : > { %s216_s16 = sshll.u32 %s1016_s15, 4  ;;  %s1017_s17 = smov 64   ;;  %s217_s16 = int_to_ptr.vmem [resolvable:$true] %s216_s16 }
  0x16   : > { %p1124_p11 = pnand %p681_p10, %p1089_p1  ;;  %s1018_s24 = smov 4  }
  0x17   : > { %s203_s7 = sshll.u32 %s1268_s1, 4  ;;  %s228_s6 = sshll.u32 %s1260_s3, 4  ;;  %s204_s7 = int_to_ptr.hbm [resolvable:$true] %s203_s7  ;;  %s229_s6 = int_to_ptr.hbm [resolvable:$true] %s228_s6 }
  0x18   : > { %684 = dma.hbm_to_vmem [thread:$0]  (!%p1124_p11), %s204_s7, 16, %s206_s10, [#allocation6]  }
  0x19   : > { %687 = dma.hbm_to_vmem [thread:$0]  (!%p1124_p11), %s215_s13, 256, %s217_s16, [#allocation6], %s1017_s17, %s1017_s17, %s1018_s24  }
  0x1a   : > { %s1019_s9 = smov [#allocation8]   ;;  %s48_s7 = sadd.s32 1, %s1001_s20 }
  0x1b   : > { %s230_s11 = sshll.u32 %s1019_s9, 4  ;;  %s39_s10 = sadd.s32 1, %s1009_s22  ;;  %s231_s11 = int_to_ptr.vmem [resolvable:$true] %s230_s11 }
  0x1c   : > { %690 = dma.hbm_to_vmem [thread:$0]  (!%p1124_p11), %s229_s6, 256, %s231_s11, [#allocation9], %s1017_s17, %s1017_s17, %s1018_s24  }
  0x1d   : > { %p55_p12 = scmp.ne.s32.totalorder %s1001_s20, %s997_s19  ;;  %p41_p13 = scmp.ge.s32.totalorder %s39_s10, 2 }
  0x1e   : > { %p56_p0 = scmp.eq.s32.totalorder %s1013_s23, 0  ;;  %p705_p5 = scmp.lt.s32.totalorder %s1013_s23, 2 }
  0x1f   : > { %p1144_p3 = por %p1093_p2, %p55_p12  ;;  %s1279_s10 = smov (%p41_p13, %s39_s10), 0 }
  0x20   : > { %p1151_p7 = por %p56_p0, %p55_p12  ;;  %s244_s14 = sand.u32 1, %s1001_s20  }
  0x21   : > { %s43_s15 = ssub.s32 %s1009_s22, %s1279_s10  ;;  %s621_s16 = sshll.u32 %s244_s14, 3 }
  0x22   : > { %p46_p10 = scmp.eq.s32.totalorder %s43_s15, 0  ;;  %s622_s17 = sshll.u32 %s1009_s22, 3 }
  0x23   : > { %s253_s30 = scalar_lea.hbm %s1257_s0, %s622_s17  ;;  %s248_s6 = scalar_lea.vmem [#allocation2], %s621_s16 }
  0x24   : > { %s1160_s27 = scalar_select %p46_p10, %s1001_s20, %s48_s7  }
  0x25   : > { %s257_s9 = sshll.u32 %s248_s6, 4  ;;  %s255_s11 = sshll.u32 %s253_s30, 4  ;;  %s258_s9 = int_to_ptr.vmem [resolvable:$true] %s257_s9  ;;  %s256_s11 = int_to_ptr.hbm [resolvable:$true] %s255_s11 }
  0x26   : > { %p692_p2 = pnand %p705_p5, %p1151_p7  ;;  %s245_s1 = scalar_lea.sflag [#allocation3], %s244_s14 }
  0x27   : > { %266 = sbr.rel (%p1112_p8) target bundleno = 454 (0x1c6), region = 36  ;;  %s1172_s7 = sand.u32 (!%p1112_p8), 1, %s997_s19  }
  0x28   : > { %694 = dma.hbm_to_vmem [thread:$0]  (!%p692_p2), %s256_s11, 128, %s258_s9, %s245_s1  }
  0x29   : > { %s624_s15 = sshll.u32 (!%p1112_p8), %s1172_s7, 3  ;;  %s269_s16 = scalar_lea.sflag (!%p1112_p8), [#allocation3], %s1172_s7 }
  0x2a   : > { %s272_s17 = scalar_lea.vmem (!%p1112_p8), [#allocation2], %s624_s15 }
  0x2c   : > { %972 = dma.done.wait (%p1099_p4), %s269_s16, 128  }
  0x2d   : > { %974 = vsyncadd (%p1099_p4), %s269_s16, 4294967168 }
  0x2e   : > { %976 = dma.done.wait (%p1089_p1), [#allocation6], 272  }
  0x2f   : > { %978 = vsyncadd (%p1089_p1), [#allocation6], 4294967024 }
  0x30   : > { %980 = dma.done.wait (%p1089_p1), [#allocation9], 256  }
  0x31   : > { %982 = vsyncadd (%p1089_p1), [#allocation9], 4294967040  ;;  %v321_v0 = vld [vmem:[%s272_s17] sm:$0xff]  ;;  %vm323_vm0 = vcmask 261120   ;;  %v658_v5 = vld [vmem:[#allocation7] sm:$0xff]  ;;  %s629_s1 = sshll.u32 %s1172_s7, 2 }
  0x32   : > { %v322_v1 = vmul.f32 %v321_v0, %v321_v0  ;;  %v659_v3 = vld [vmem:[#allocation7 + $0x8] sm:$0xff]  ;;  %v661_v4 = vld [vmem:[#allocation8 + $0x8] sm:$0xff]  ;;  %v660_v6 = vld [vmem:[#allocation8] sm:$0xff]  ;;  %s655_s26 = sshll.u32 %s1005_s21, 2  ;;  %s628_s28 = sshll.u32 %s1172_s7, 4  ;;  %vm428_vm4 = vcmask 257024  }
  0x33   : > { %371 = vmatpush.bf16.msra.mxu0 %v659_v3  ;;  %420 = vmatpush.bf16.msra.mxu1 %v661_v4  ;;  %v768_v17 = vld [vmem:[#allocation5] ss:$0 sm:$0xff]  ;;  %s465_s14 = scalar_lea.hbm %s1262_s5, %s655_s26  ;;  %vm380_vm5 = vcmask 125952   ;;  %s319_s24 = scalar_lea.vmem [#allocation11], %s629_s1 }
  0x34   : > { %v324_v2 = vsel %vm323_vm0, %v322_v1, 0.0  ;;  %s467_s25 = sshll.u32 %s319_s24, 4  ;;  %s469_s30 = sshll.u32 %s465_s14, 4  ;;  %s468_s25 = int_to_ptr.vmem [resolvable:$true] %s467_s25  ;;  %s470_s30 = int_to_ptr.hbm [resolvable:$true] %s469_s30 }
  0x35   : > { %325 = vadd.xlane.f32.xlu0 %v324_v2  ;;  %s1020_s6 = smov 96   ;;  %s1021_s9 = smov 112  }
  0x36   : > { %s1197_s11 = scalar_lea.vmem [#allocation10], %s628_s28  ;;  %s436_s15 = scalar_lea.sflag [#allocation12], %s1172_s7 }
  0x37   : > { %372 = vmatpush.bf16.msra.mxu0 %v658_v5  ;;  %421 = vmatpush.bf16.msra.mxu1 %v660_v6  ;;  %s905_s16 = sshra.s32 %s470_s30, 4  ;;  %s911_s8 = scalar_lea.hbm %s1262_s5, 8  ;;  %s906_s16 = int_to_ptr.hbm [resolvable:$true] %s905_s16 }
  0x38   : > { %s907_s17 = scalar_lea.hbm %s906_s16, 4  ;;  %p912_p11 = scmp.lt.s32.totalorder %s906_s16, %s1262_s5 }
  0x39   : > { %p908_p1 = scmp.ne.s32.totalorder %s906_s16, %s907_s17  ;;  %p913_p12 = scmp.lt.s32.totalorder %s911_s8, %s907_s17 }
  0x3b   : > { %p909_p4 = pnand %p908_p1, %p1144_p3  ;;  %p914_p13 = por %p913_p12, %p912_p11 }
  0x3d   : > { %p910_p8 = pneg %p909_p4 }
  0x3f   : > { %p915_p0 = pnand %p914_p13, %p910_p8 }
  0xa8   : > { %v326_v7 = vpop.xlane.xlu0 %325 }
  0xa9   : > { %v327_v8 = vmul.f32 0.03125, %v326_v7 }
  0xab   : > { %769 = vrsqrt.f32 %v327_v8  ;;  %vm334_vm2 = vweird.f32 %v327_v8 }
  0xb1   : > { %v770_v9 = vpop.eup %769 }
  0xb2   : > { %v329_v10 = vmul.f32 %v770_v9, %v327_v8  ;;  %vm335_vm1 = vweird.f32 %v770_v9 }
  0xb3   : > { %vm336_vm3 = vmor %vm334_vm2, %vm335_vm1 }
  0xb4   : > { %v330_v11 = vmul.f32 %v770_v9, %v329_v10 }
  0xb6   : > { %v331_v12 = vmul.f32 0.5, %v330_v11 }
  0xb8   : > { %v332_v13 = vsub.f32 1.5, %v331_v12 }
  0xba   : > { %v333_v14 = vmul.f32 %v770_v9, %v332_v13 }
  0xbc   : > { %v337_v15 = vsel %vm336_vm3, %v770_v9, %v333_v14 }
  0xbd   : > { %v338_v16 = vmin.f32 %v337_v15, 1e+08 }
  0xbf   : > { %v339_v18 = vmul.f32 %v338_v16, %v321_v0 }
  0xc1   : > { %v344_v19 = vmul.f32 %v768_v17, %v339_v18 }
  0xc3   : > { %v345_v20 = vpack.c.bf16 %v344_v19, %v344_v19 }
  0xc5   : > { %638 = vmatmul.msk.bf16.vlgmr.msra.gmra.mxu0 %vm323_vm0, %v345_v20  ;;  %650 = vmatmul.msk.bf16.vlgmr.msra.gmra.mxu1 %vm323_vm0, %v345_v20 }
 0x142   : > { %v374_v21 = vpop.f32.mrf.mxu0  ;;  %v423_v22 = vpop.f32.mrf.mxu1 }
 0x143   : > { %v378_v23 = vmul.f32 0.25, %v374_v21  ;;  %v427_v24 = vpack.c.bf16 %v423_v22, %v423_v22 }
 0x145   : > { %v379_v25 = vpack.c.bf16 %v378_v23, %v378_v23  ;;  %429 = vst.msk [vmem:[%s319_s24] sm:$0xf] %vm428_vm4, %v427_v24 }
 0x147   : > { %388 = vrot.lane.b32.xlu1 %v379_v25, %s1020_s6  ;;  %383 = vrot.lane.b32.xlu0 %v379_v25, %s1021_s9  ;;  %381 = vst.msk [vmem:[%s1197_s11] sm:$0xf] %vm380_vm5, %v379_v25 }
 0x148   : > { %918 = shalt.err (!%p915_p0)
}
 0x149   : > { %678 = dma.vmem_to_hbm [thread:$0]  (%p1144_p3), %s468_s25, 64, %s470_s30, %s436_s15  }
 0x14a   : > { %v376_v26 = vpop.f32.mrf.mxu0  ;;  %v425_v27 = vpop.f32.mrf.mxu1  ;;  %s1022_s28 = smov 80   ;;  %s662_s24 = sshll.u32 %s1005_s21, 4 }
 0x14b   : > { %s448_s16 = scalar_lea.hbm %s1261_s4, %s662_s24  ;;  %s449_s17 = sshll.u32 %s1197_s11, 4  ;;  %s450_s17 = int_to_ptr.vmem [resolvable:$true] %s449_s17 }
 0x14c   : > { %s451_s25 = sshll.u32 %s448_s16, 4  ;;  %s431_s30 = scalar_lea.sflag [#allocation4], %s1172_s7  ;;  %s452_s25 = int_to_ptr.hbm [resolvable:$true] %s451_s25 }
 0x14d   : > { %s933_s21 = sshra.s32 %s452_s25, 4  ;;  %s939_s8 = scalar_lea.hbm %s1261_s4, 32  ;;  %s934_s21 = int_to_ptr.hbm [resolvable:$true] %s933_s21 }
 0x14e   : > { %s935_s15 = scalar_lea.hbm %s934_s21, 16  ;;  %p940_p2 = scmp.lt.s32.totalorder %s934_s21, %s1261_s4 }
 0x14f   : > { %393 = vrot.lane.b32.xlu1 %v379_v25, %s1022_s28  ;;  %p936_p5 = scmp.ne.s32.totalorder %s934_s21, %s935_s15  ;;  %p941_p1 = scmp.lt.s32.totalorder %s939_s8, %s935_s15 }
 0x151   : > { %p937_p7 = pnand %p936_p5, %p1144_p3  ;;  %p942_p4 = por %p941_p1, %p940_p2 }
 0x153   : > { %p938_p10 = pneg %p937_p7 }
 0x155   : > { %p943_p8 = pnand %p942_p4, %p938_p10 }
 0x1b9   : > { %v389_v28 = vpop.permute.xlu1 %388  ;;  %v384_v29 = vpop.permute.xlu0 %383 }
 0x1ba   : > { %640 = vst.msk [vmem:[%s1197_s11 + $0x8] sm:$0xf] %vm380_vm5, %v389_v28 }
 0x1bb   : > { %639 = vst.msk [vmem:[%s1197_s11 + $0x4] sm:$0xf] %vm380_vm5, %v384_v29 }
 0x1c1   : > { %v394_v30 = vpop.permute.xlu1 %393 }
 0x1c2   : > { %641 = vst.msk [vmem:[%s1197_s11 + $0xc] sm:$0xf] %vm380_vm5, %v394_v30 }
 0x1c3   : > { %946 = shalt.err (!%p943_p8)
}
 0x1c4   : > { %s1023_s7 = smov 64   ;;  %s1024_s11 = smov 4  }
 0x1c5   : > { %677 = dma.vmem_to_hbm [thread:$0]  (%p1144_p3), %s450_s17, 256, %s452_s25, %s431_s30, %s1023_s7, %s1023_s7, %s1024_s11  }
 0x1c6 PF: > { %s481_s28 = sand.u32 1, %s993_s18   ;;  %p696_p11 = pnand %p620_p9, %p1104_p6 }
 0x1c7   : > { %s482_s24 = scalar_lea.sflag [#allocation4], %s481_s28 }
 0x1c8   : > { %p697_p12 = pneg %p696_p11 }
 0x1ca   : > { %984 = dma.done.wait (%p697_p12), %s482_s24, 256  }
 0x1cb   : > { %986 = vsyncadd (%p697_p12), %s482_s24, 4294967040  ;;  %s492_s6 = scalar_lea.sflag [#allocation12], %s481_s28 }
 0x1cc   : > { %988 = dma.done.wait (%p697_p12), %s492_s6, 64  }
 0x1cd   : > { %990 = vsyncadd (%p697_p12), %s492_s6, 4294967232  ;;  %s27_s23 = sadd.s32 1, %s1013_s23   ;;  %s1273_s18 = smov %s997_s19 }
 0x1ce   : > { %p24_p13 = scmp.ge.s32.totalorder %s27_s23, 4   ;;  %s1274_s19 = smov %s1001_s20 }
 0x1cf   : > { %s1275_s20 = smov %s1160_s27  ;;  %s1276_s21 = smov %s1009_s22 }
 0x1d0   : > { %s1277_s22 = smov %s1279_s10  ;;  %26 = sbr.rel (!%p24_p13) target bundleno = 12 (0xc), region = 113 }
 0x1d5   :  { %498 = vsyncpa [#allocation3], 1 }
 0x1d6   :  { %500 = vsyncpa [#allocation3 + $0x1], 1 }
 0x1d7   :  { %501 = vsyncpa [#allocation6], 1 }
 0x1d8   :  { %502 = vsyncpa [#allocation9], 1 }
 0x1d9   :  { %503 = vsyncpa [#allocation4], 1 }
 0x1da   :  { %505 = vsyncpa [#allocation4 + $0x1], 1 }
 0x1db   :  { %506 = vsyncpa [#allocation12], 1 }
 0x1dc   :  { %508 = vsyncpa [#allocation12 + $0x1], 1 }

// kernel: tpu_custom_call.1
= control target key start
LH: loop header
LB: loop body
LE: loop exit
PB: predicated region body
PF: predicated region fallthrough
CT: control target
= control target key end

     0   :  { %s1257_s0 = inlined_call_operand.hbm [shape: f32[2,8,32], index: 0, kind: input, shape index: {}]   ;;  %s1258_s1 = inlined_call_operand.hbm [shape: f32[1,32], index: 1, kind: input, shape index: {}]   ;;  %s1259_s2 = inlined_call_operand.hbm [shape: bf16[32,64], index: 2, kind: input, shape index: {}]   ;;  %s1260_s3 = inlined_call_operand.hbm [shape: bf16[32,32], index: 3, kind: input, shape index: {}]   ;;  %s1261_s4 = inlined_call_operand.hbm [shape: bf16[2,4,8,16], index: 4, kind: output, shape index: {0}]   ;;  %s1262_s5 = inlined_call_operand.hbm [shape: bf16[2,8,32], index: 5, kind: output, shape index: {1}]  }
   0x1   :  { %1263 = sst [smem:[#allocation18_spill]] %s1258_s1 }
   0x2   :  { %11 = vsyncpa [#allocation3], 0 }
   0x3   :  { %13 = vsyncpa [#allocation3 + $0x1], 0 }
   0x4   :  { %14 = vsyncpa [#allocation6], 0 }
   0x5   :  { %15 = vsyncpa [#allocation9], 0 }
   0x6   :  { %16 = vsyncpa [#allocation4], 0 }
   0x7   :  { %18 = vsyncpa [#allocation4 + $0x1], 0 }
   0x8   :  { %19 = vsyncpa [#allocation12], 0 }
   0x9   :  { %21 = vsyncpa [#allocation12 + $0x1], 0  ;;  %s1055_s18 = smov 0   ;;  %s1057_s19 = smov 0  }
   0xa   :  { %s1059_s20 = smov 0   ;;  %s1061_s21 = smov 0  }
   0xb   :  { %s1063_s22 = smov 0   ;;  %s1065_s23 = smov 0  }
   0xc LB: > { %s614_s24 = sadd.s32 4294967295, %s1013_s23   ;;  %s615_s25 = sadd.s32 4294967294, %s1013_s23   ;;  %s1013_s23 = sphi %s1065_s23, %s27_s23   ;;  %s1009_s22 = sphi %s1063_s22, %s1277_s22   ;;  %s1005_s21 = sphi %s1061_s21, %s1276_s21   ;;  %s1001_s20 = sphi %s1059_s20, %s1275_s20   ;;  %s997_s19 = sphi %s1057_s19, %s1274_s19   ;;  %s993_s18 = sphi %s1055_s18, %s1273_s18  }
   0xd   : > { %p61_p0 = scmp.ne.s32.totalorder %s997_s19, %s993_s18  ;;  %p1089_p1 = scmp.eq.s32.totalorder %s614_s24, 0 }
   0xe   : > { %p1093_p2 = scmp.eq.s32.totalorder %s614_s24, 1  ;;  %p156_p3 = scmp.eq.s32.totalorder %s615_s25, 1 }
   0xf   : > { %p1099_p4 = por %p1089_p1, %p61_p0  ;;  %p616_p5 = scmp.ge.s32.totalorder %s1013_s23, 1 }
  0x10   : > { %p1104_p6 = por %p156_p3, %p61_p0  ;;  %p191_p7 = scmp.lt.s32.totalorder %s1013_s23, 3 }
  0x11   : > { %s1268_s1 = sld [smem:[#allocation18_spill]]  ;;  %p620_p9 = scmp.ge.s32.totalorder %s1013_s23, 2 }
  0x12   : > { %p1112_p8 = pnand %p616_p5, %p191_p7  ;;  %s1015_s9 = smov [#allocation5]  }
  0x13   : > { %s205_s10 = sshll.u32 %s1015_s9, 4  ;;  %s214_s13 = sshll.u32 %s1259_s2, 4  ;;  %s206_s10 = int_to_ptr.vmem [resolvable:$true] %s205_s10  ;;  %s215_s13 = int_to_ptr.hbm [resolvable:$true] %s214_s13 }
  0x14   : > { %p681_p10 = pneg %p1112_p8  ;;  %s1016_s15 = smov [#allocation7]  }
  0x15   : > { %s216_s16 = sshll.u32 %s1016_s15, 4  ;;  %s1017_s17 = smov 64   ;;  %s217_s16 = int_to_ptr.vmem [resolvable:$true] %s216_s16 }
  0x16   : > { %p1124_p11 = pnand %p681_p10, %p1089_p1  ;;  %s1018_s24 = smov 4  }
  0x17   : > { %s203_s7 = sshll.u32 %s1268_s1, 4  ;;  %s228_s6 = sshll.u32 %s1260_s3, 4  ;;  %s204_s7 = int_to_ptr.hbm [resolvable:$true] %s203_s7  ;;  %s229_s6 = int_to_ptr.hbm [resolvable:$true] %s228_s6 }
  0x18   : > { %684 = dma.hbm_to_vmem [thread:$0]  (!%p1124_p11), %s204_s7, 16, %s206_s10, [#allocation6]  }
  0x19   : > { %687 = dma.hbm_to_vmem [thread:$0]  (!%p1124_p11), %s215_s13, 256, %s217_s16, [#allocation6], %s1017_s17, %s1017_s17, %s1018_s24  }
  0x1a   : > { %s1019_s9 = smov [#allocation8]   ;;  %s48_s7 = sadd.s32 1, %s1001_s20 }
  0x1b   : > { %s230_s11 = sshll.u32 %s1019_s9, 4  ;;  %s39_s10 = sadd.s32 1, %s1009_s22  ;;  %s231_s11 = int_to_ptr.vmem [resolvable:$true] %s230_s11 }
  0x1c   : > { %690 = dma.hbm_to_vmem [thread:$0]  (!%p1124_p11), %s229_s6, 256, %s231_s11, [#allocation9], %s1017_s17, %s1017_s17, %s1018_s24  }
  0x1d   : > { %p55_p12 = scmp.ne.s32.totalorder %s1001_s20, %s997_s19  ;;  %p41_p13 = scmp.ge.s32.totalorder %s39_s10, 2 }
  0x1e   : > { %p56_p0 = scmp.eq.s32.totalorder %s1013_s23, 0  ;;  %p705_p5 = scmp.lt.s32.totalorder %s1013_s23, 2 }
  0x1f   : > { %p1144_p3 = por %p1093_p2, %p55_p12  ;;  %s1279_s10 = smov (%p41_p13, %s39_s10), 0 }
  0x20   : > { %p1151_p7 = por %p56_p0, %p55_p12  ;;  %s244_s14 = sand.u32 1, %s1001_s20  }
  0x21   : > { %s43_s15 = ssub.s32 %s1009_s22, %s1279_s10  ;;  %s621_s16 = sshll.u32 %s244_s14, 3 }
  0x22   : > { %p46_p10 = scmp.eq.s32.totalorder %s43_s15, 0  ;;  %s622_s17 = sshll.u32 %s1009_s22, 3 }
  0x23   : > { %s253_s30 = scalar_lea.hbm %s1257_s0, %s622_s17  ;;  %s248_s6 = scalar_lea.vmem [#allocation2], %s621_s16 }
  0x24   : > { %s1160_s27 = scalar_select %p46_p10, %s1001_s20, %s48_s7  }
  0x25   : > { %s257_s9 = sshll.u32 %s248_s6, 4  ;;  %s255_s11 = sshll.u32 %s253_s30, 4  ;;  %s258_s9 = int_to_ptr.vmem [resolvable:$true] %s257_s9  ;;  %s256_s11 = int_to_ptr.hbm [resolvable:$true] %s255_s11 }
  0x26   : > { %p692_p2 = pnand %p705_p5, %p1151_p7  ;;  %s245_s1 = scalar_lea.sflag [#allocation3], %s244_s14 }
  0x27   : > { %266 = sbr.rel (%p1112_p8) target bundleno = 454 (0x1c6), region = 36  ;;  %s1172_s7 = sand.u32 (!%p1112_p8), 1, %s997_s19  }
  0x28   : > { %694 = dma.hbm_to_vmem [thread:$0]  (!%p692_p2), %s256_s11, 128, %s258_s9, %s245_s1  }
  0x29   : > { %s624_s15 = sshll.u32 (!%p1112_p8), %s1172_s7, 3  ;;  %s269_s16 = scalar_lea.sflag (!%p1112_p8), [#allocation3], %s1172_s7 }
  0x2a   : > { %s272_s17 = scalar_lea.vmem (!%p1112_p8), [#allocation2], %s624_s15 }
  0x2c   : > { %972 = dma.done.wait (%p1099_p4), %s269_s16, 128  }
  0x2d   : > { %974 = vsyncadd (%p1099_p4), %s269_s16, 4294967168 }
  0x2e   : > { %976 = dma.done.wait (%p1089_p1), [#allocation6], 272  }
  0x2f   : > { %978 = vsyncadd (%p1089_p1), [#allocation6], 4294967024 }
  0x30   : > { %980 = dma.done.wait (%p1089_p1), [#allocation9], 256  }
  0x31   : > { %982 = vsyncadd (%p1089_p1), [#allocation9], 4294967040  ;;  %v321_v0 = vld [vmem:[%s272_s17] sm:$0xff]  ;;  %vm323_vm0 = vcmask 261120   ;;  %v658_v5 = vld [vmem:[#allocation7] sm:$0xff]  ;;  %s629_s1 = sshll.u32 %s1172_s7, 2 }
  0x32   : > { %v322_v1 = vmul.f32 %v321_v0, %v321_v0  ;;  %v659_v3 = vld [vmem:[#allocation7 + $0x8] sm:$0xff]  ;;  %v661_v4 = vld [vmem:[#allocation8 + $0x8] sm:$0xff]  ;;  %v660_v6 = vld [vmem:[#allocation8] sm:$0xff]  ;;  %s655_s26 = sshll.u32 %s1005_s21, 2  ;;  %s628_s28 = sshll.u32 %s1172_s7, 4  ;;  %vm428_vm4 = vcmask 257024  }
  0x33   : > { %371 = vmatpush.bf16.msra.mxu0 %v659_v3  ;;  %420 = vmatpush.bf16.msra.mxu1 %v661_v4  ;;  %v768_v17 = vld [vmem:[#allocation5] ss:$0 sm:$0xff]  ;;  %s465_s14 = scalar_lea.hbm %s1262_s5, %s655_s26  ;;  %vm380_vm5 = vcmask 125952   ;;  %s319_s24 = scalar_lea.vmem [#allocation11], %s629_s1 }
  0x34   : > { %v324_v2 = vsel %vm323_vm0, %v322_v1, 0.0  ;;  %s467_s25 = sshll.u32 %s319_s24, 4  ;;  %s469_s30 = sshll.u32 %s465_s14, 4  ;;  %s468_s25 = int_to_ptr.vmem [resolvable:$true] %s467_s25  ;;  %s470_s30 = int_to_ptr.hbm [resolvable:$true] %s469_s30 }
  0x35   : > { %325 = vadd.xlane.f32.xlu0 %v324_v2  ;;  %s1020_s6 = smov 96   ;;  %s1021_s9 = smov 112  }
  0x36   : > { %s1197_s11 = scalar_lea.vmem [#allocation10], %s628_s28  ;;  %s436_s15 = scalar_lea.sflag [#allocation12], %s1172_s7 }
  0x37   : > { %372 = vmatpush.bf16.msra.mxu0 %v658_v5  ;;  %421 = vmatpush.bf16.msra.mxu1 %v660_v6  ;;  %s905_s16 = sshra.s32 %s470_s30, 4  ;;  %s911_s8 = scalar_lea.hbm %s1262_s5, 8  ;;  %s906_s16 = int_to_ptr.hbm [resolvable:$true] %s905_s16 }
  0x38   : > { %s907_s17 = scalar_lea.hbm %s906_s16, 4  ;;  %p912_p11 = scmp.lt.s32.totalorder %s906_s16, %s1262_s5 }
  0x39   : > { %p908_p1 = scmp.ne.s32.totalorder %s906_s16, %s907_s17  ;;  %p913_p12 = scmp.lt.s32.totalorder %s911_s8, %s907_s17 }
  0x3b   : > { %p909_p4 = pnand %p908_p1, %p1144_p3  ;;  %p914_p13 = por %p913_p12, %p912_p11 }
  0x3d   : > { %p910_p8 = pneg %p909_p4 }
  0x3f   : > { %p915_p0 = pnand %p914_p13, %p910_p8 }
  0xa8   : > { %v326_v7 = vpop.xlane.xlu0 %325 }
  0xa9   : > { %v327_v8 = vmul.f32 0.03125, %v326_v7 }
  0xab   : > { %769 = vrsqrt.f32 %v327_v8  ;;  %vm334_vm2 = vweird.f32 %v327_v8 }
  0xb1   : > { %v770_v9 = vpop.eup %769 }
  0xb2   : > { %v329_v10 = vmul.f32 %v770_v9, %v327_v8  ;;  %vm335_vm1 = vweird.f32 %v770_v9 }
  0xb3   : > { %vm336_vm3 = vmor %vm334_vm2, %vm335_vm1 }
  0xb4   : > { %v330_v11 = vmul.f32 %v770_v9, %v329_v10 }
  0xb6   : > { %v331_v12 = vmul.f32 0.5, %v330_v11 }
  0xb8   : > { %v332_v13 = vsub.f32 1.5, %v331_v12 }
  0xba   : > { %v333_v14 = vmul.f32 %v770_v9, %v332_v13 }
  0xbc   : > { %v337_v15 = vsel %vm336_vm3, %v770_v9, %v333_v14 }
  0xbd   : > { %v338_v16 = vmin.f32 %v337_v15, 1e+08 }
  0xbf   : > { %v339_v18 = vmul.f32 %v338_v16, %v321_v0 }
  0xc1   : > { %v344_v19 = vmul.f32 %v768_v17, %v339_v18 }
  0xc3   : > { %v345_v20 = vpack.c.bf16 %v344_v19, %v344_v19 }
  0xc5   : > { %638 = vmatmul.msk.bf16.vlgmr.msra.gmra.mxu0 %vm323_vm0, %v345_v20  ;;  %650 = vmatmul.msk.bf16.vlgmr.msra.gmra.mxu1 %vm323_vm0, %v345_v20 }
 0x142   : > { %v374_v21 = vpop.f32.mrf.mxu0  ;;  %v423_v22 = vpop.f32.mrf.mxu1 }
 0x143   : > { %v378_v23 = vmul.f32 0.25, %v374_v21  ;;  %v427_v24 = vpack.c.bf16 %v423_v22, %v423_v22 }
 0x145   : > { %v379_v25 = vpack.c.bf16 %v378_v23, %v378_v23  ;;  %429 = vst.msk [vmem:[%s319_s24] sm:$0xf] %vm428_vm4, %v427_v24 }
 0x147   : > { %388 = vrot.lane.b32.xlu1 %v379_v25, %s1020_s6  ;;  %383 = vrot.lane.b32.xlu0 %v379_v25, %s1021_s9  ;;  %381 = vst.msk [vmem:[%s1197_s11] sm:$0xf] %vm380_vm5, %v379_v25 }
 0x148   : > { %918 = shalt.err (!%p915_p0)
}
 0x149   : > { %678 = dma.vmem_to_hbm [thread:$0]  (%p1144_p3), %s468_s25, 64, %s470_s30, %s436_s15  }
 0x14a   : > { %v376_v26 = vpop.f32.mrf.mxu0  ;;  %v425_v27 = vpop.f32.mrf.mxu1  ;;  %s1022_s28 = smov 80   ;;  %s662_s24 = sshll.u32 %s1005_s21, 4 }
 0x14b   : > { %s448_s16 = scalar_lea.hbm %s1261_s4, %s662_s24  ;;  %s449_s17 = sshll.u32 %s1197_s11, 4  ;;  %s450_s17 = int_to_ptr.vmem [resolvable:$true] %s449_s17 }
 0x14c   : > { %s451_s25 = sshll.u32 %s448_s16, 4  ;;  %s431_s30 = scalar_lea.sflag [#allocation4], %s1172_s7  ;;  %s452_s25 = int_to_ptr.hbm [resolvable:$true] %s451_s25 }
 0x14d   : > { %s933_s21 = sshra.s32 %s452_s25, 4  ;;  %s939_s8 = scalar_lea.hbm %s1261_s4, 32  ;;  %s934_s21 = int_to_ptr.hbm [resolvable:$true] %s933_s21 }
 0x14e   : > { %s935_s15 = scalar_lea.hbm %s934_s21, 16  ;;  %p940_p2 = scmp.lt.s32.totalorder %s934_s21, %s1261_s4 }
 0x14f   : > { %393 = vrot.lane.b32.xlu1 %v379_v25, %s1022_s28  ;;  %p936_p5 = scmp.ne.s32.totalorder %s934_s21, %s935_s15  ;;  %p941_p1 = scmp.lt.s32.totalorder %s939_s8, %s935_s15 }
 0x151   : > { %p937_p7 = pnand %p936_p5, %p1144_p3  ;;  %p942_p4 = por %p941_p1, %p940_p2 }
 0x153   : > { %p938_p10 = pneg %p937_p7 }
 0x155   : > { %p943_p8 = pnand %p942_p4, %p938_p10 }
 0x1b9   : > { %v389_v28 = vpop.permute.xlu1 %388  ;;  %v384_v29 = vpop.permute.xlu0 %383 }
 0x1ba   : > { %640 = vst.msk [vmem:[%s1197_s11 + $0x8] sm:$0xf] %vm380_vm5, %v389_v28 }
 0x1bb   : > { %639 = vst.msk [vmem:[%s1197_s11 + $0x4] sm:$0xf] %vm380_vm5, %v384_v29 }
 0x1c1   : > { %v394_v30 = vpop.permute.xlu1 %393 }
 0x1c2   : > { %641 = vst.msk [vmem:[%s1197_s11 + $0xc] sm:$0xf] %vm380_vm5, %v394_v30 }
 0x1c3   : > { %946 = shalt.err (!%p943_p8)
}
 0x1c4   : > { %s1023_s7 = smov 64   ;;  %s1024_s11 = smov 4  }
 0x1c5   : > { %677 = dma.vmem_to_hbm [thread:$0]  (%p1144_p3), %s450_s17, 256, %s452_s25, %s431_s30, %s1023_s7, %s1023_s7, %s1024_s11  }
 0x1c6 PF: > { %s481_s28 = sand.u32 1, %s993_s18   ;;  %p696_p11 = pnand %p620_p9, %p1104_p6 }
 0x1c7   : > { %s482_s24 = scalar_lea.sflag [#allocation4], %s481_s28 }
 0x1c8   : > { %p697_p12 = pneg %p696_p11 }
 0x1ca   : > { %984 = dma.done.wait (%p697_p12), %s482_s24, 256  }
 0x1cb   : > { %986 = vsyncadd (%p697_p12), %s482_s24, 4294967040  ;;  %s492_s6 = scalar_lea.sflag [#allocation12], %s481_s28 }
 0x1cc   : > { %988 = dma.done.wait (%p697_p12), %s492_s6, 64  }
 0x1cd   : > { %990 = vsyncadd (%p697_p12), %s492_s6, 4294967232  ;;  %s27_s23 = sadd.s32 1, %s1013_s23   ;;  %s1273_s18 = smov %s997_s19 }
 0x1ce   : > { %p24_p13 = scmp.ge.s32.totalorder %s27_s23, 4   ;;  %s1274_s19 = smov %s1001_s20 }
 0x1cf   : > { %s1275_s20 = smov %s1160_s27  ;;  %s1276_s21 = smov %s1009_s22 }
 0x1d0   : > { %s1277_s22 = smov %s1279_s10  ;;  %26 = sbr.rel (!%p24_p13) target bundleno = 12 (0xc), region = 113 }
 0x1d5   :  { %498 = vsyncpa [#allocation3], 1 }
 0x1d6   :  { %500 = vsyncpa [#allocation3 + $0x1], 1 }
 0x1d7   :  { %501 = vsyncpa [#allocation6], 1 }
 0x1d8   :  { %502 = vsyncpa [#allocation9], 1 }
 0x1d9   :  { %503 = vsyncpa [#allocation4], 1 }
 0x1da   :  { %505 = vsyncpa [#allocation4 + $0x1], 1 }
 0x1db   :  { %506 = vsyncpa [#allocation12], 1 }
 0x1dc   :  { %508 = vsyncpa [#allocation12 + $0x1], 1 }

</bundles_post_ra>
